<compile_context>
chip_gen: v7x
topology: tpu7x:2x2x1
jax: 0.10.0
libtpu: 0.0.40
codegen_flags: <defaults>
</compile_context>

<pallas_src>
import functools

import jax
import jax.numpy as jnp
from jax.experimental import pallas as pl
from jax.experimental.pallas import tpu as pltpu


def _round_up(x, m):
    return (x + m - 1) // m * m


def _intra_fused_kernel(x_ref, m_ref, w_ref, b_ref, o_ref, stk_ref, *, W, cp):
    """Fused 3-layer 3x3 conv network on B_TILE images (batch on the lane axis).

    x_ref  : (Cp, LANE)        input, channels on sublanes, [image, pixel] on lanes
    m_ref  : (9, Cp, LANE)     per-tap boundary masks, pre-broadcast across sublanes
    w_ref  : (3, Cp, 9*Cp)     BN-folded packed weights, column = tap*Cp + ci
    b_ref  : (3, Cp, LANE)     BN-folded biases, pre-broadcast across lanes
    o_ref  : (Cp, LANE)        output (padded channel rows are zero)
    stk_ref: (9*Cp, LANE) f32  VMEM scratch holding the 9 shifted/masked taps
    """
    lane = x_ref.shape[1]

    def conv3x3(act, layer, relu):
        # Build the (9*Cp, LANE) im2col-style stack directly in VMEM scratch.
        tap = 0
        for dy in (-1, 0, 1):
            for dx in (-1, 0, 1):
                s = dy * W + dx                       # flat spatial shift
                if s == 0:
                    shifted = act
                else:
                    # result[i] = act[(i + s) % LANE]; wrap/edge lanes are masked.
                    shifted = pltpu.roll(act, shift=(-s) % lane, axis=1)
                if dy == 0 and dx == 0:
                    stk_ref[pl.ds(tap * cp, cp), :] = shifted      # center tap: mask == 1
                else:
                    stk_ref[pl.ds(tap * cp, cp), :] = shifted * m_ref[tap]
                tap += 1
        y = jnp.dot(w_ref[layer], stk_ref[...],
                    preferred_element_type=jnp.float32) + b_ref[layer]
        if relu:
            y = jnp.maximum(y, 0.0)
        return y

    a = x_ref[...]
    a = conv3x3(a, 0, relu=True)
    a = conv3x3(a, 1, relu=True)
    a = conv3x3(a, 2, relu=False)
    o_ref[...] = a.astype(o_ref.dtype)                # lane-dense, sublane-aligned store


def _fold_bn(gamma, beta, rmean, rvar, eps):
    scale = gamma / jnp.sqrt(rvar + eps)
    shift = beta - rmean * scale
    return scale, shift


def _fold_bn_into_conv(w_oihw, b, gamma, beta, rmean, rvar, eps):
    s, t = _fold_bn(gamma, beta, rmean, rvar, eps)
    return w_oihw * s[:, None, None, None], b * s + t


def _pack_weight(w_oihw, cp):
    """(Cout, Cin, 3, 3) -> (cp, 9*cp), column index = (ky*3+kx)*cp + ci, zero padded."""
    co, ci, _, _ = w_oihw.shape
    w = jnp.transpose(w_oihw, (0, 2, 3, 1))           # (co, 3, 3, ci)
    w = jnp.pad(w, ((0, cp - co), (0, 0), (0, 0), (0, cp - ci)))
    return w.reshape(cp, 9 * cp)


def _tap_masks(H, W):
    """(9, H*W) f32 validity masks per 3x3 tap, tap order = (dy, dx) row-major."""
    y = jnp.arange(H)[:, None]
    x = jnp.arange(W)[None, :]
    rows = []
    for dy in (-1, 0, 1):
        for dx in (-1, 0, 1):
            valid = ((y + dy >= 0) & (y + dy < H) &
                     (x + dx >= 0) & (x + dx < W))
            rows.append(valid.reshape(H * W))
    return jnp.stack(rows, axis=0).astype(jnp.float32)


def intra_network_pallas(x_nchw, p):
    """Forward of IntraNetwork. x_nchw: (N, in_ch, H, W) -> (N, 1, out_ch, H, W)."""
    N, Cin, H, W = x_nchw.shape
    HW = H * W
    mid = p["w1"].shape[0]
    out_ch = p["w3"].shape[0]
    cp = max(_round_up(Cin, 8), _round_up(mid, 8), _round_up(out_ch, 8))

    # Batch-on-lanes tiling: keep >= 2 grid steps when N >= 2 (v7x megacore),
    # cap the lane tile so the 9x stacked activation stays small in VMEM.
    # Lane tiling is always at whole-image granularity (roll+mask requires it).
    max_lane = 8192
    steps = 2 if N >= 2 else 1
    b_tile = -(-N // steps)
    b_tile = max(1, min(b_tile, max_lane // HW if HW <= max_lane else 1))
    steps = -(-N // b_tile)
    n_pad = steps * b_tile
    lane = b_tile * HW

    # Fold eval-mode BN into conv weights/biases (layers 1 & 2); layer 3 has no BN.
    w1f, b1f = _fold_bn_into_conv(p["w1"], p["b1"], p["g1"], p["be1"],
                                  p["rm1"], p["rv1"], p["eps"])
    w2f, b2f = _fold_bn_into_conv(p["w2"], p["b2"], p["g2"], p["be2"],
                                  p["rm2"], p["rv2"], p["eps"])
    w3f, b3f = p["w3"], p["b3"]

    wstack = jnp.stack([_pack_weight(w1f, cp),
                        _pack_weight(w2f, cp),
                        _pack_weight(w3f, cp)])                     # (3, cp, 9*cp)
    bstack = jnp.stack([
        jnp.broadcast_to(jnp.pad(b, (0, cp - b.shape[0]))[:, None], (cp, lane))
        for b in (b1f, b2f, b3f)])                                  # (3, cp, lane)

    masks = _tap_masks(H, W)                                        # (9, HW)
    masks = jnp.broadcast_to(jnp.tile(masks, (1, b_tile))[:, None, :],
                             (9, cp, lane))                         # (9, cp, lane)

    # (N, Cin, H, W) -> (cp, n_pad*HW): channels on sublanes, [image, pixel] on lanes.
    x_pad = jnp.pad(x_nchw, ((0, n_pad - N), (0, cp - Cin), (0, 0), (0, 0)))
    x_flat = x_pad.reshape(n_pad, cp, HW).transpose(1, 0, 2).reshape(cp, n_pad * HW)

    kernel = functools.partial(_intra_fused_kernel, W=W, cp=cp)
    full3 = lambda n: (0, 0, 0)

    out_flat = pl.pallas_call(
        kernel,
        out_shape=jax.ShapeDtypeStruct((cp, n_pad * HW), jnp.float32),
        grid_spec=pltpu.PrefetchScalarGridSpec(
            num_scalar_prefetch=0,
            grid=(steps,),
            in_specs=[
                pl.BlockSpec((cp, lane), lambda n: (0, n)),
                pl.BlockSpec((9, cp, lane), full3),
                pl.BlockSpec((3, cp, 9 * cp), full3),
                pl.BlockSpec((3, cp, lane), full3),
            ],
            out_specs=pl.BlockSpec((cp, lane), lambda n: (0, n)),
            scratch_shapes=[pltpu.VMEM((9 * cp, lane), jnp.float32)],
        ),
        compiler_params=pltpu.CompilerParams(
            dimension_semantics=("parallel",)),                      # megacore on v7x
    )(x_flat, masks, wstack, bstack)

    out = out_flat.reshape(cp, n_pad, HW).transpose(1, 0, 2)[:N, :out_ch]
    return out.reshape(N, out_ch, H, W)[:, None, :, :, :]            # unsqueeze(1)


def init_params(key, in_ch, mid_ch, out_ch, eps=1e-5):
    """Deterministic parameters. Conv weights in PyTorch OIHW layout; BN params per channel."""
    ks = jax.random.split(key, 10)
    p = {}
    p["w1"] = jax.random.normal(ks[0], (mid_ch, in_ch, 3, 3), jnp.float32) * 0.1
    p["b1"] = jax.random.normal(ks[1], (mid_ch,), jnp.float32) * 0.1
    p["g1"] = 1.0 + 0.1 * jax.random.normal(ks[2], (mid_ch,), jnp.float32)
    p["be1"] = 0.1 * jax.random.normal(ks[3], (mid_ch,), jnp.float32)
    p["rm1"] = 0.1 * jax.random.normal(ks[4], (mid_ch,), jnp.float32)
    p["rv1"] = 1.0 + 0.1 * jnp.abs(jax.random.normal(ks[5], (mid_ch,), jnp.float32))
    p["w2"] = jax.random.normal(ks[6], (mid_ch, mid_ch, 3, 3), jnp.float32) * 0.1
    p["b2"] = jax.random.normal(ks[7], (mid_ch,), jnp.float32) * 0.1
    p["g2"] = jnp.ones((mid_ch,), jnp.float32)
    p["be2"] = jnp.zeros((mid_ch,), jnp.float32)
    p["rm2"] = jnp.zeros((mid_ch,), jnp.float32)
    p["rv2"] = jnp.ones((mid_ch,), jnp.float32)
    p["w3"] = jax.random.normal(ks[8], (out_ch, mid_ch, 3, 3), jnp.float32) * 0.1
    p["b3"] = jax.random.normal(ks[9], (out_ch,), jnp.float32) * 0.1
    p["eps"] = eps
    return p


def intra_network_ref(x_nchw, p):
    """Pure-JAX reference (NCHW, lax.conv) for correctness checking."""
    def conv(x, w, b):
        y = jax.lax.conv_general_dilated(
            x, w, window_strides=(1, 1), padding=((1, 1), (1, 1)),
            dimension_numbers=("NCHW", "OIHW", "NCHW"))
        return y + b[None, :, None, None]

    s1, t1 = _fold_bn(p["g1"], p["be1"], p["rm1"], p["rv1"], p["eps"])
    s2, t2 = _fold_bn(p["g2"], p["be2"], p["rm2"], p["rv2"], p["eps"])

    h = conv(x_nchw, p["w1"], p["b1"])
    h = jax.nn.relu(h * s1[None, :, None, None] + t1[None, :, None, None])
    h = conv(h, p["w2"], p["b2"])
    h = jax.nn.relu(h * s2[None, :, None, None] + t2[None, :, None, None])
    h = conv(h, p["w3"], p["b3"])
    return h[:, None, :, :, :]


if __name__ == "__main__":
    N, in_ch, mid_ch, out_ch, H, W = 2, 4, 8, 4, 16, 16

    key = jax.random.PRNGKey(0)
    kx, kp = jax.random.split(key)
    x = jax.random.normal(kx, (N, in_ch, H, W), jnp.float32)
    params = init_params(kp, in_ch, mid_ch, out_ch)

    out = intra_network_pallas(x, params)
    out = jax.block_until_ready(out)

    ref = jax.block_until_ready(intra_network_ref(x, params))
    assert out.shape == (N, 1, out_ch, H, W), out.shape
    assert jnp.allclose(out, ref, atol=1e-3, rtol=1e-3), float(
        jnp.max(jnp.abs(out - ref)))

    print("KERNEL_OK")
</pallas_src>

<mosaic_0001>
module attributes {stable_mosaic.version = 11 : i64} {
  func.func @_intra_fused_kernel(%arg0: i32, %arg1: memref<8x256xf32, #tpu.memory_space<vmem>>, %arg2: memref<9x8x256xf32, #tpu.memory_space<vmem>>, %arg3: memref<3x8x72xf32, #tpu.memory_space<vmem>>, %arg4: memref<3x8x256xf32, #tpu.memory_space<vmem>>, %arg5: memref<8x256xf32, #tpu.memory_space<vmem>>, %arg6: memref<72x256xf32, #tpu.memory_space<vmem>>) attributes {dimension_semantics = [#tpu.dimension_semantics<parallel>], iteration_bounds = array<i64: 2>, scalar_prefetch = 0 : i64, scratch_operands = 1 : i64, tpu.core_type = #tpu.core_type<tc>, window_params = [{transform_indices = @transform_0, window_bounds = array<i64: 8, 256>}, {pipeline_mode = #tpu.pipeline_mode<synchronous>, transform_indices = @transform_1, window_bounds = array<i64: 9, 8, 256>}, {pipeline_mode = #tpu.pipeline_mode<synchronous>, transform_indices = @transform_2, window_bounds = array<i64: 3, 8, 72>}, {pipeline_mode = #tpu.pipeline_mode<synchronous>, transform_indices = @transform_3, window_bounds = array<i64: 3, 8, 256>}, {transform_indices = @transform_4, window_bounds = array<i64: 8, 256>}]} {
    %c0 = arith.constant 0 : index
    %c0_0 = arith.constant 0 : index
    %0 = vector.load %arg1[%c0, %c0_0] : memref<8x256xf32, #tpu.memory_space<vmem>>, vector<8x256xf32>
    %c17_i32 = arith.constant 17 : i32
    %1 = tpu.dynamic_rotate %0 by %c17_i32 dim 1 : vector<8x256xf32>, i32 -> vector<8x256xf32>
    %c0_1 = arith.constant 0 : index
    %c0_2 = arith.constant 0 : index
    %c0_3 = arith.constant 0 : index
    %2 = vector.load %arg2[%c0_1, %c0_2, %c0_3] : memref<9x8x256xf32, #tpu.memory_space<vmem>>, vector<1x8x256xf32>
    %3 = vector.shape_cast %2 : vector<1x8x256xf32> to vector<8x256xf32>
    %4 = arith.mulf %1, %3 : vector<8x256xf32>
    %c0_4 = arith.constant 0 : index
    %c0_5 = arith.constant 0 : index
    %5 = vector.load %arg6[%c0_4, %c0_5] : memref<72x256xf32, #tpu.memory_space<vmem>>, vector<8x256xf32>
    tpu.vector_store %arg6[%c0_4, %c0_5], %4 {strides = array<i32>} : memref<72x256xf32, #tpu.memory_space<vmem>>, vector<8x256xf32>,
    %c16_i32 = arith.constant 16 : i32
    %6 = tpu.dynamic_rotate %0 by %c16_i32 dim 1 : vector<8x256xf32>, i32 -> vector<8x256xf32>
    %c1 = arith.constant 1 : index
    %c0_6 = arith.constant 0 : index
    %c0_7 = arith.constant 0 : index
    %7 = vector.load %arg2[%c1, %c0_6, %c0_7] : memref<9x8x256xf32, #tpu.memory_space<vmem>>, vector<1x8x256xf32>
    %8 = vector.shape_cast %7 : vector<1x8x256xf32> to vector<8x256xf32>
    %9 = arith.mulf %6, %8 : vector<8x256xf32>
    %c8 = arith.constant 8 : index
    %c0_8 = arith.constant 0 : index
    %10 = vector.load %arg6[%c8, %c0_8] : memref<72x256xf32, #tpu.memory_space<vmem>>, vector<8x256xf32>
    tpu.vector_store %arg6[%c8, %c0_8], %9 {strides = array<i32>} : memref<72x256xf32, #tpu.memory_space<vmem>>, vector<8x256xf32>,
    %c15_i32 = arith.constant 15 : i32
    %11 = tpu.dynamic_rotate %0 by %c15_i32 dim 1 : vector<8x256xf32>, i32 -> vector<8x256xf32>
    %c2 = arith.constant 2 : index
    %c0_9 = arith.constant 0 : index
    %c0_10 = arith.constant 0 : index
    %12 = vector.load %arg2[%c2, %c0_9, %c0_10] : memref<9x8x256xf32, #tpu.memory_space<vmem>>, vector<1x8x256xf32>
    %13 = vector.shape_cast %12 : vector<1x8x256xf32> to vector<8x256xf32>
    %14 = arith.mulf %11, %13 : vector<8x256xf32>
    %c16 = arith.constant 16 : index
    %c0_11 = arith.constant 0 : index
    %15 = vector.load %arg6[%c16, %c0_11] : memref<72x256xf32, #tpu.memory_space<vmem>>, vector<8x256xf32>
    tpu.vector_store %arg6[%c16, %c0_11], %14 {strides = array<i32>} : memref<72x256xf32, #tpu.memory_space<vmem>>, vector<8x256xf32>,
    %c1_i32 = arith.constant 1 : i32
    %16 = tpu.dynamic_rotate %0 by %c1_i32 dim 1 : vector<8x256xf32>, i32 -> vector<8x256xf32>
    %c3 = arith.constant 3 : index
    %c0_12 = arith.constant 0 : index
    %c0_13 = arith.constant 0 : index
    %17 = vector.load %arg2[%c3, %c0_12, %c0_13] : memref<9x8x256xf32, #tpu.memory_space<vmem>>, vector<1x8x256xf32>
    %18 = vector.shape_cast %17 : vector<1x8x256xf32> to vector<8x256xf32>
    %19 = arith.mulf %16, %18 : vector<8x256xf32>
    %c24 = arith.constant 24 : index
    %c0_14 = arith.constant 0 : index
    %20 = vector.load %arg6[%c24, %c0_14] : memref<72x256xf32, #tpu.memory_space<vmem>>, vector<8x256xf32>
    tpu.vector_store %arg6[%c24, %c0_14], %19 {strides = array<i32>} : memref<72x256xf32, #tpu.memory_space<vmem>>, vector<8x256xf32>,
    %c32 = arith.constant 32 : index
    %c0_15 = arith.constant 0 : index
    %21 = vector.load %arg6[%c32, %c0_15] : memref<72x256xf32, #tpu.memory_space<vmem>>, vector<8x256xf32>
    tpu.vector_store %arg6[%c32, %c0_15], %0 {strides = array<i32>} : memref<72x256xf32, #tpu.memory_space<vmem>>, vector<8x256xf32>,
    %c255_i32 = arith.constant 255 : i32
    %22 = tpu.dynamic_rotate %0 by %c255_i32 dim 1 : vector<8x256xf32>, i32 -> vector<8x256xf32>
    %c5 = arith.constant 5 : index
    %c0_16 = arith.constant 0 : index
    %c0_17 = arith.constant 0 : index
    %23 = vector.load %arg2[%c5, %c0_16, %c0_17] : memref<9x8x256xf32, #tpu.memory_space<vmem>>, vector<1x8x256xf32>
    %24 = vector.shape_cast %23 : vector<1x8x256xf32> to vector<8x256xf32>
    %25 = arith.mulf %22, %24 : vector<8x256xf32>
    %c40 = arith.constant 40 : index
    %c0_18 = arith.constant 0 : index
    %26 = vector.load %arg6[%c40, %c0_18] : memref<72x256xf32, #tpu.memory_space<vmem>>, vector<8x256xf32>
    tpu.vector_store %arg6[%c40, %c0_18], %25 {strides = array<i32>} : memref<72x256xf32, #tpu.memory_space<vmem>>, vector<8x256xf32>,
    %c241_i32 = arith.constant 241 : i32
    %27 = tpu.dynamic_rotate %0 by %c241_i32 dim 1 : vector<8x256xf32>, i32 -> vector<8x256xf32>
    %c6 = arith.constant 6 : index
    %c0_19 = arith.constant 0 : index
    %c0_20 = arith.constant 0 : index
    %28 = vector.load %arg2[%c6, %c0_19, %c0_20] : memref<9x8x256xf32, #tpu.memory_space<vmem>>, vector<1x8x256xf32>
    %29 = vector.shape_cast %28 : vector<1x8x256xf32> to vector<8x256xf32>
    %30 = arith.mulf %27, %29 : vector<8x256xf32>
    %c48 = arith.constant 48 : index
    %c0_21 = arith.constant 0 : index
    %31 = vector.load %arg6[%c48, %c0_21] : memref<72x256xf32, #tpu.memory_space<vmem>>, vector<8x256xf32>
    tpu.vector_store %arg6[%c48, %c0_21], %30 {strides = array<i32>} : memref<72x256xf32, #tpu.memory_space<vmem>>, vector<8x256xf32>,
    %c240_i32 = arith.constant 240 : i32
    %32 = tpu.dynamic_rotate %0 by %c240_i32 dim 1 : vector<8x256xf32>, i32 -> vector<8x256xf32>
    %c7 = arith.constant 7 : index
    %c0_22 = arith.constant 0 : index
    %c0_23 = arith.constant 0 : index
    %33 = vector.load %arg2[%c7, %c0_22, %c0_23] : memref<9x8x256xf32, #tpu.memory_space<vmem>>, vector<1x8x256xf32>
    %34 = vector.shape_cast %33 : vector<1x8x256xf32> to vector<8x256xf32>
    %35 = arith.mulf %32, %34 : vector<8x256xf32>
    %c56 = arith.constant 56 : index
    %c0_24 = arith.constant 0 : index
    %36 = vector.load %arg6[%c56, %c0_24] : memref<72x256xf32, #tpu.memory_space<vmem>>, vector<8x256xf32>
    tpu.vector_store %arg6[%c56, %c0_24], %35 {strides = array<i32>} : memref<72x256xf32, #tpu.memory_space<vmem>>, vector<8x256xf32>,
    %c239_i32 = arith.constant 239 : i32
    %37 = tpu.dynamic_rotate %0 by %c239_i32 dim 1 : vector<8x256xf32>, i32 -> vector<8x256xf32>
    %c8_25 = arith.constant 8 : index
    %c0_26 = arith.constant 0 : index
    %c0_27 = arith.constant 0 : index
    %38 = vector.load %arg2[%c8_25, %c0_26, %c0_27] : memref<9x8x256xf32, #tpu.memory_space<vmem>>, vector<1x8x256xf32>
    %39 = vector.shape_cast %38 : vector<1x8x256xf32> to vector<8x256xf32>
    %40 = arith.mulf %37, %39 : vector<8x256xf32>
    %c64 = arith.constant 64 : index
    %c0_28 = arith.constant 0 : index
    %41 = vector.load %arg6[%c64, %c0_28] : memref<72x256xf32, #tpu.memory_space<vmem>>, vector<8x256xf32>
    tpu.vector_store %arg6[%c64, %c0_28], %40 {strides = array<i32>} : memref<72x256xf32, #tpu.memory_space<vmem>>, vector<8x256xf32>,
    %c0_29 = arith.constant 0 : index
    %c0_30 = arith.constant 0 : index
    %c0_31 = arith.constant 0 : index
    %42 = vector.load %arg3[%c0_29, %c0_30, %c0_31] : memref<3x8x72xf32, #tpu.memory_space<vmem>>, vector<1x8x72xf32>
    %43 = vector.shape_cast %42 : vector<1x8x72xf32> to vector<8x72xf32>
    %c0_32 = arith.constant 0 : index
    %c0_33 = arith.constant 0 : index
    %44 = vector.load %arg6[%c0_32, %c0_33] : memref<72x256xf32, #tpu.memory_space<vmem>>, vector<72x256xf32>
    %cst = arith.constant dense<0.000000e+00> : vector<8x256xf32>
    %45 = tpu.matmul %43, %44, %cst {dimension_numbers = #tpu.dot_dimension_numbers<[1], [0], [0], [1], [0, 0, 1, 1], [], []>} : vector<8x72xf32>, vector<72x256xf32>, vector<8x256xf32> -> vector<8x256xf32>
    %c0_34 = arith.constant 0 : index
    %c0_35 = arith.constant 0 : index
    %c0_36 = arith.constant 0 : index
    %46 = vector.load %arg4[%c0_34, %c0_35, %c0_36] : memref<3x8x256xf32, #tpu.memory_space<vmem>>, vector<1x8x256xf32>
    %47 = vector.shape_cast %46 : vector<1x8x256xf32> to vector<8x256xf32>
    %48 = arith.addf %45, %47 : vector<8x256xf32>
    %cst_37 = arith.constant 0.000000e+00 : f32
    %49 = vector.broadcast %cst_37 : f32 to vector<8x256xf32>
    %50 = arith.maximumf %48, %49 : vector<8x256xf32>
    %c17_i32_38 = arith.constant 17 : i32
    %51 = tpu.dynamic_rotate %50 by %c17_i32_38 dim 1 : vector<8x256xf32>, i32 -> vector<8x256xf32>
    %c0_39 = arith.constant 0 : index
    %c0_40 = arith.constant 0 : index
    %c0_41 = arith.constant 0 : index
    %52 = vector.load %arg2[%c0_39, %c0_40, %c0_41] : memref<9x8x256xf32, #tpu.memory_space<vmem>>, vector<1x8x256xf32>
    %53 = vector.shape_cast %52 : vector<1x8x256xf32> to vector<8x256xf32>
    %54 = arith.mulf %51, %53 : vector<8x256xf32>
    %c0_42 = arith.constant 0 : index
    %c0_43 = arith.constant 0 : index
    %55 = vector.load %arg6[%c0_42, %c0_43] : memref<72x256xf32, #tpu.memory_space<vmem>>, vector<8x256xf32>
    tpu.vector_store %arg6[%c0_42, %c0_43], %54 {strides = array<i32>} : memref<72x256xf32, #tpu.memory_space<vmem>>, vector<8x256xf32>,
    %c16_i32_44 = arith.constant 16 : i32
    %56 = tpu.dynamic_rotate %50 by %c16_i32_44 dim 1 : vector<8x256xf32>, i32 -> vector<8x256xf32>
    %c1_45 = arith.constant 1 : index
    %c0_46 = arith.constant 0 : index
    %c0_47 = arith.constant 0 : index
    %57 = vector.load %arg2[%c1_45, %c0_46, %c0_47] : memref<9x8x256xf32, #tpu.memory_space<vmem>>, vector<1x8x256xf32>
    %58 = vector.shape_cast %57 : vector<1x8x256xf32> to vector<8x256xf32>
    %59 = arith.mulf %56, %58 : vector<8x256xf32>
    %c8_48 = arith.constant 8 : index
    %c0_49 = arith.constant 0 : index
    %60 = vector.load %arg6[%c8_48, %c0_49] : memref<72x256xf32, #tpu.memory_space<vmem>>, vector<8x256xf32>
    tpu.vector_store %arg6[%c8_48, %c0_49], %59 {strides = array<i32>} : memref<72x256xf32, #tpu.memory_space<vmem>>, vector<8x256xf32>,
    %c15_i32_50 = arith.constant 15 : i32
    %61 = tpu.dynamic_rotate %50 by %c15_i32_50 dim 1 : vector<8x256xf32>, i32 -> vector<8x256xf32>
    %c2_51 = arith.constant 2 : index
    %c0_52 = arith.constant 0 : index
    %c0_53 = arith.constant 0 : index
    %62 = vector.load %arg2[%c2_51, %c0_52, %c0_53] : memref<9x8x256xf32, #tpu.memory_space<vmem>>, vector<1x8x256xf32>
    %63 = vector.shape_cast %62 : vector<1x8x256xf32> to vector<8x256xf32>
    %64 = arith.mulf %61, %63 : vector<8x256xf32>
    %c16_54 = arith.constant 16 : index
    %c0_55 = arith.constant 0 : index
    %65 = vector.load %arg6[%c16_54, %c0_55] : memref<72x256xf32, #tpu.memory_space<vmem>>, vector<8x256xf32>
    tpu.vector_store %arg6[%c16_54, %c0_55], %64 {strides = array<i32>} : memref<72x256xf32, #tpu.memory_space<vmem>>, vector<8x256xf32>,
    %c1_i32_56 = arith.constant 1 : i32
    %66 = tpu.dynamic_rotate %50 by %c1_i32_56 dim 1 : vector<8x256xf32>, i32 -> vector<8x256xf32>
    %c3_57 = arith.constant 3 : index
    %c0_58 = arith.constant 0 : index
    %c0_59 = arith.constant 0 : index
    %67 = vector.load %arg2[%c3_57, %c0_58, %c0_59] : memref<9x8x256xf32, #tpu.memory_space<vmem>>, vector<1x8x256xf32>
    %68 = vector.shape_cast %67 : vector<1x8x256xf32> to vector<8x256xf32>
    %69 = arith.mulf %66, %68 : vector<8x256xf32>
    %c24_60 = arith.constant 24 : index
    %c0_61 = arith.constant 0 : index
    %70 = vector.load %arg6[%c24_60, %c0_61] : memref<72x256xf32, #tpu.memory_space<vmem>>, vector<8x256xf32>
    tpu.vector_store %arg6[%c24_60, %c0_61], %69 {strides = array<i32>} : memref<72x256xf32, #tpu.memory_space<vmem>>, vector<8x256xf32>,
    %c32_62 = arith.constant 32 : index
    %c0_63 = arith.constant 0 : index
    %71 = vector.load %arg6[%c32_62, %c0_63] : memref<72x256xf32, #tpu.memory_space<vmem>>, vector<8x256xf32>
    tpu.vector_store %arg6[%c32_62, %c0_63], %50 {strides = array<i32>} : memref<72x256xf32, #tpu.memory_space<vmem>>, vector<8x256xf32>,
    %c255_i32_64 = arith.constant 255 : i32
    %72 = tpu.dynamic_rotate %50 by %c255_i32_64 dim 1 : vector<8x256xf32>, i32 -> vector<8x256xf32>
    %c5_65 = arith.constant 5 : index
    %c0_66 = arith.constant 0 : index
    %c0_67 = arith.constant 0 : index
    %73 = vector.load %arg2[%c5_65, %c0_66, %c0_67] : memref<9x8x256xf32, #tpu.memory_space<vmem>>, vector<1x8x256xf32>
    %74 = vector.shape_cast %73 : vector<1x8x256xf32> to vector<8x256xf32>
    %75 = arith.mulf %72, %74 : vector<8x256xf32>
    %c40_68 = arith.constant 40 : index
    %c0_69 = arith.constant 0 : index
    %76 = vector.load %arg6[%c40_68, %c0_69] : memref<72x256xf32, #tpu.memory_space<vmem>>, vector<8x256xf32>
    tpu.vector_store %arg6[%c40_68, %c0_69], %75 {strides = array<i32>} : memref<72x256xf32, #tpu.memory_space<vmem>>, vector<8x256xf32>,
    %c241_i32_70 = arith.constant 241 : i32
    %77 = tpu.dynamic_rotate %50 by %c241_i32_70 dim 1 : vector<8x256xf32>, i32 -> vector<8x256xf32>
    %c6_71 = arith.constant 6 : index
    %c0_72 = arith.constant 0 : index
    %c0_73 = arith.constant 0 : index
    %78 = vector.load %arg2[%c6_71, %c0_72, %c0_73] : memref<9x8x256xf32, #tpu.memory_space<vmem>>, vector<1x8x256xf32>
    %79 = vector.shape_cast %78 : vector<1x8x256xf32> to vector<8x256xf32>
    %80 = arith.mulf %77, %79 : vector<8x256xf32>
    %c48_74 = arith.constant 48 : index
    %c0_75 = arith.constant 0 : index
    %81 = vector.load %arg6[%c48_74, %c0_75] : memref<72x256xf32, #tpu.memory_space<vmem>>, vector<8x256xf32>
    tpu.vector_store %arg6[%c48_74, %c0_75], %80 {strides = array<i32>} : memref<72x256xf32, #tpu.memory_space<vmem>>, vector<8x256xf32>,
    %c240_i32_76 = arith.constant 240 : i32
    %82 = tpu.dynamic_rotate %50 by %c240_i32_76 dim 1 : vector<8x256xf32>, i32 -> vector<8x256xf32>
    %c7_77 = arith.constant 7 : index
    %c0_78 = arith.constant 0 : index
    %c0_79 = arith.constant 0 : index
    %83 = vector.load %arg2[%c7_77, %c0_78, %c0_79] : memref<9x8x256xf32, #tpu.memory_space<vmem>>, vector<1x8x256xf32>
    %84 = vector.shape_cast %83 : vector<1x8x256xf32> to vector<8x256xf32>
    %85 = arith.mulf %82, %84 : vector<8x256xf32>
    %c56_80 = arith.constant 56 : index
    %c0_81 = arith.constant 0 : index
    %86 = vector.load %arg6[%c56_80, %c0_81] : memref<72x256xf32, #tpu.memory_space<vmem>>, vector<8x256xf32>
    tpu.vector_store %arg6[%c56_80, %c0_81], %85 {strides = array<i32>} : memref<72x256xf32, #tpu.memory_space<vmem>>, vector<8x256xf32>,
    %c239_i32_82 = arith.constant 239 : i32
    %87 = tpu.dynamic_rotate %50 by %c239_i32_82 dim 1 : vector<8x256xf32>, i32 -> vector<8x256xf32>
    %c8_83 = arith.constant 8 : index
    %c0_84 = arith.constant 0 : index
    %c0_85 = arith.constant 0 : index
    %88 = vector.load %arg2[%c8_83, %c0_84, %c0_85] : memref<9x8x256xf32, #tpu.memory_space<vmem>>, vector<1x8x256xf32>
    %89 = vector.shape_cast %88 : vector<1x8x256xf32> to vector<8x256xf32>
    %90 = arith.mulf %87, %89 : vector<8x256xf32>
    %c64_86 = arith.constant 64 : index
    %c0_87 = arith.constant 0 : index
    %91 = vector.load %arg6[%c64_86, %c0_87] : memref<72x256xf32, #tpu.memory_space<vmem>>, vector<8x256xf32>
    tpu.vector_store %arg6[%c64_86, %c0_87], %90 {strides = array<i32>} : memref<72x256xf32, #tpu.memory_space<vmem>>, vector<8x256xf32>,
    %c1_88 = arith.constant 1 : index
    %c0_89 = arith.constant 0 : index
    %c0_90 = arith.constant 0 : index
    %92 = vector.load %arg3[%c1_88, %c0_89, %c0_90] : memref<3x8x72xf32, #tpu.memory_space<vmem>>, vector<1x8x72xf32>
    %93 = vector.shape_cast %92 : vector<1x8x72xf32> to vector<8x72xf32>
    %c0_91 = arith.constant 0 : index
    %c0_92 = arith.constant 0 : index
    %94 = vector.load %arg6[%c0_91, %c0_92] : memref<72x256xf32, #tpu.memory_space<vmem>>, vector<72x256xf32>
    %cst_93 = arith.constant dense<0.000000e+00> : vector<8x256xf32>
    %95 = tpu.matmul %93, %94, %cst_93 {dimension_numbers = #tpu.dot_dimension_numbers<[1], [0], [0], [1], [0, 0, 1, 1], [], []>} : vector<8x72xf32>, vector<72x256xf32>, vector<8x256xf32> -> vector<8x256xf32>
    %c1_94 = arith.constant 1 : index
    %c0_95 = arith.constant 0 : index
    %c0_96 = arith.constant 0 : index
    %96 = vector.load %arg4[%c1_94, %c0_95, %c0_96] : memref<3x8x256xf32, #tpu.memory_space<vmem>>, vector<1x8x256xf32>
    %97 = vector.shape_cast %96 : vector<1x8x256xf32> to vector<8x256xf32>
    %98 = arith.addf %95, %97 : vector<8x256xf32>
    %cst_97 = arith.constant 0.000000e+00 : f32
    %99 = vector.broadcast %cst_97 : f32 to vector<8x256xf32>
    %100 = arith.maximumf %98, %99 : vector<8x256xf32>
    %c17_i32_98 = arith.constant 17 : i32
    %101 = tpu.dynamic_rotate %100 by %c17_i32_98 dim 1 : vector<8x256xf32>, i32 -> vector<8x256xf32>
    %c0_99 = arith.constant 0 : index
    %c0_100 = arith.constant 0 : index
    %c0_101 = arith.constant 0 : index
    %102 = vector.load %arg2[%c0_99, %c0_100, %c0_101] : memref<9x8x256xf32, #tpu.memory_space<vmem>>, vector<1x8x256xf32>
    %103 = vector.shape_cast %102 : vector<1x8x256xf32> to vector<8x256xf32>
    %104 = arith.mulf %101, %103 : vector<8x256xf32>
    %c0_102 = arith.constant 0 : index
    %c0_103 = arith.constant 0 : index
    %105 = vector.load %arg6[%c0_102, %c0_103] : memref<72x256xf32, #tpu.memory_space<vmem>>, vector<8x256xf32>
    tpu.vector_store %arg6[%c0_102, %c0_103], %104 {strides = array<i32>} : memref<72x256xf32, #tpu.memory_space<vmem>>, vector<8x256xf32>,
    %c16_i32_104 = arith.constant 16 : i32
    %106 = tpu.dynamic_rotate %100 by %c16_i32_104 dim 1 : vector<8x256xf32>, i32 -> vector<8x256xf32>
    %c1_105 = arith.constant 1 : index
    %c0_106 = arith.constant 0 : index
    %c0_107 = arith.constant 0 : index
    %107 = vector.load %arg2[%c1_105, %c0_106, %c0_107] : memref<9x8x256xf32, #tpu.memory_space<vmem>>, vector<1x8x256xf32>
    %108 = vector.shape_cast %107 : vector<1x8x256xf32> to vector<8x256xf32>
    %109 = arith.mulf %106, %108 : vector<8x256xf32>
    %c8_108 = arith.constant 8 : index
    %c0_109 = arith.constant 0 : index
    %110 = vector.load %arg6[%c8_108, %c0_109] : memref<72x256xf32, #tpu.memory_space<vmem>>, vector<8x256xf32>
    tpu.vector_store %arg6[%c8_108, %c0_109], %109 {strides = array<i32>} : memref<72x256xf32, #tpu.memory_space<vmem>>, vector<8x256xf32>,
    %c15_i32_110 = arith.constant 15 : i32
    %111 = tpu.dynamic_rotate %100 by %c15_i32_110 dim 1 : vector<8x256xf32>, i32 -> vector<8x256xf32>
    %c2_111 = arith.constant 2 : index
    %c0_112 = arith.constant 0 : index
    %c0_113 = arith.constant 0 : index
    %112 = vector.load %arg2[%c2_111, %c0_112, %c0_113] : memref<9x8x256xf32, #tpu.memory_space<vmem>>, vector<1x8x256xf32>
    %113 = vector.shape_cast %112 : vector<1x8x256xf32> to vector<8x256xf32>
    %114 = arith.mulf %111, %113 : vector<8x256xf32>
    %c16_114 = arith.constant 16 : index
    %c0_115 = arith.constant 0 : index
    %115 = vector.load %arg6[%c16_114, %c0_115] : memref<72x256xf32, #tpu.memory_space<vmem>>, vector<8x256xf32>
    tpu.vector_store %arg6[%c16_114, %c0_115], %114 {strides = array<i32>} : memref<72x256xf32, #tpu.memory_space<vmem>>, vector<8x256xf32>,
    %c1_i32_116 = arith.constant 1 : i32
    %116 = tpu.dynamic_rotate %100 by %c1_i32_116 dim 1 : vector<8x256xf32>, i32 -> vector<8x256xf32>
    %c3_117 = arith.constant 3 : index
    %c0_118 = arith.constant 0 : index
    %c0_119 = arith.constant 0 : index
    %117 = vector.load %arg2[%c3_117, %c0_118, %c0_119] : memref<9x8x256xf32, #tpu.memory_space<vmem>>, vector<1x8x256xf32>
    %118 = vector.shape_cast %117 : vector<1x8x256xf32> to vector<8x256xf32>
    %119 = arith.mulf %116, %118 : vector<8x256xf32>
    %c24_120 = arith.constant 24 : index
    %c0_121 = arith.constant 0 : index
    %120 = vector.load %arg6[%c24_120, %c0_121] : memref<72x256xf32, #tpu.memory_space<vmem>>, vector<8x256xf32>
    tpu.vector_store %arg6[%c24_120, %c0_121], %119 {strides = array<i32>} : memref<72x256xf32, #tpu.memory_space<vmem>>, vector<8x256xf32>,
    %c32_122 = arith.constant 32 : index
    %c0_123 = arith.constant 0 : index
    %121 = vector.load %arg6[%c32_122, %c0_123] : memref<72x256xf32, #tpu.memory_space<vmem>>, vector<8x256xf32>
    tpu.vector_store %arg6[%c32_122, %c0_123], %100 {strides = array<i32>} : memref<72x256xf32, #tpu.memory_space<vmem>>, vector<8x256xf32>,
    %c255_i32_124 = arith.constant 255 : i32
    %122 = tpu.dynamic_rotate %100 by %c255_i32_124 dim 1 : vector<8x256xf32>, i32 -> vector<8x256xf32>
    %c5_125 = arith.constant 5 : index
    %c0_126 = arith.constant 0 : index
    %c0_127 = arith.constant 0 : index
    %123 = vector.load %arg2[%c5_125, %c0_126, %c0_127] : memref<9x8x256xf32, #tpu.memory_space<vmem>>, vector<1x8x256xf32>
    %124 = vector.shape_cast %123 : vector<1x8x256xf32> to vector<8x256xf32>
    %125 = arith.mulf %122, %124 : vector<8x256xf32>
    %c40_128 = arith.constant 40 : index
    %c0_129 = arith.constant 0 : index
    %126 = vector.load %arg6[%c40_128, %c0_129] : memref<72x256xf32, #tpu.memory_space<vmem>>, vector<8x256xf32>
    tpu.vector_store %arg6[%c40_128, %c0_129], %125 {strides = array<i32>} : memref<72x256xf32, #tpu.memory_space<vmem>>, vector<8x256xf32>,
    %c241_i32_130 = arith.constant 241 : i32
    %127 = tpu.dynamic_rotate %100 by %c241_i32_130 dim 1 : vector<8x256xf32>, i32 -> vector<8x256xf32>
    %c6_131 = arith.constant 6 : index
    %c0_132 = arith.constant 0 : index
    %c0_133 = arith.constant 0 : index
    %128 = vector.load %arg2[%c6_131, %c0_132, %c0_133] : memref<9x8x256xf32, #tpu.memory_space<vmem>>, vector<1x8x256xf32>
    %129 = vector.shape_cast %128 : vector<1x8x256xf32> to vector<8x256xf32>
    %130 = arith.mulf %127, %129 : vector<8x256xf32>
    %c48_134 = arith.constant 48 : index
    %c0_135 = arith.constant 0 : index
    %131 = vector.load %arg6[%c48_134, %c0_135] : memref<72x256xf32, #tpu.memory_space<vmem>>, vector<8x256xf32>
    tpu.vector_store %arg6[%c48_134, %c0_135], %130 {strides = array<i32>} : memref<72x256xf32, #tpu.memory_space<vmem>>, vector<8x256xf32>,
    %c240_i32_136 = arith.constant 240 : i32
    %132 = tpu.dynamic_rotate %100 by %c240_i32_136 dim 1 : vector<8x256xf32>, i32 -> vector<8x256xf32>
    %c7_137 = arith.constant 7 : index
    %c0_138 = arith.constant 0 : index
    %c0_139 = arith.constant 0 : index
    %133 = vector.load %arg2[%c7_137, %c0_138, %c0_139] : memref<9x8x256xf32, #tpu.memory_space<vmem>>, vector<1x8x256xf32>
    %134 = vector.shape_cast %133 : vector<1x8x256xf32> to vector<8x256xf32>
    %135 = arith.mulf %132, %134 : vector<8x256xf32>
    %c56_140 = arith.constant 56 : index
    %c0_141 = arith.constant 0 : index
    %136 = vector.load %arg6[%c56_140, %c0_141] : memref<72x256xf32, #tpu.memory_space<vmem>>, vector<8x256xf32>
    tpu.vector_store %arg6[%c56_140, %c0_141], %135 {strides = array<i32>} : memref<72x256xf32, #tpu.memory_space<vmem>>, vector<8x256xf32>,
    %c239_i32_142 = arith.constant 239 : i32
    %137 = tpu.dynamic_rotate %100 by %c239_i32_142 dim 1 : vector<8x256xf32>, i32 -> vector<8x256xf32>
    %c8_143 = arith.constant 8 : index
    %c0_144 = arith.constant 0 : index
    %c0_145 = arith.constant 0 : index
    %138 = vector.load %arg2[%c8_143, %c0_144, %c0_145] : memref<9x8x256xf32, #tpu.memory_space<vmem>>, vector<1x8x256xf32>
    %139 = vector.shape_cast %138 : vector<1x8x256xf32> to vector<8x256xf32>
    %140 = arith.mulf %137, %139 : vector<8x256xf32>
    %c64_146 = arith.constant 64 : index
    %c0_147 = arith.constant 0 : index
    %141 = vector.load %arg6[%c64_146, %c0_147] : memref<72x256xf32, #tpu.memory_space<vmem>>, vector<8x256xf32>
    tpu.vector_store %arg6[%c64_146, %c0_147], %140 {strides = array<i32>} : memref<72x256xf32, #tpu.memory_space<vmem>>, vector<8x256xf32>,
    %c2_148 = arith.constant 2 : index
    %c0_149 = arith.constant 0 : index
    %c0_150 = arith.constant 0 : index
    %142 = vector.load %arg3[%c2_148, %c0_149, %c0_150] : memref<3x8x72xf32, #tpu.memory_space<vmem>>, vector<1x8x72xf32>
    %143 = vector.shape_cast %142 : vector<1x8x72xf32> to vector<8x72xf32>
    %c0_151 = arith.constant 0 : index
    %c0_152 = arith.constant 0 : index
    %144 = vector.load %arg6[%c0_151, %c0_152] : memref<72x256xf32, #tpu.memory_space<vmem>>, vector<72x256xf32>
    %cst_153 = arith.constant dense<0.000000e+00> : vector<8x256xf32>
    %145 = tpu.matmul %143, %144, %cst_153 {dimension_numbers = #tpu.dot_dimension_numbers<[1], [0], [0], [1], [0, 0, 1, 1], [], []>} : vector<8x72xf32>, vector<72x256xf32>, vector<8x256xf32> -> vector<8x256xf32>
    %c2_154 = arith.constant 2 : index
    %c0_155 = arith.constant 0 : index
    %c0_156 = arith.constant 0 : index
    %146 = vector.load %arg4[%c2_154, %c0_155, %c0_156] : memref<3x8x256xf32, #tpu.memory_space<vmem>>, vector<1x8x256xf32>
    %147 = vector.shape_cast %146 : vector<1x8x256xf32> to vector<8x256xf32>
    %148 = arith.addf %145, %147 : vector<8x256xf32>
    %c0_157 = arith.constant 0 : index
    %c0_158 = arith.constant 0 : index
    %149 = vector.load %arg5[%c0_157, %c0_158] : memref<8x256xf32, #tpu.memory_space<vmem>>, vector<8x256xf32>
    tpu.vector_store %arg5[%c0_157, %c0_158], %148 {strides = array<i32>} : memref<8x256xf32, #tpu.memory_space<vmem>>, vector<8x256xf32>,
    return
  }
  func.func @transform_0(%arg0: i32) -> (i32, i32) {
    %c0_i32 = arith.constant 0 : i32
    %c0_i32_0 = arith.constant 0 : i32
    return %c0_i32, %arg0 : i32, i32
  }
  func.func @transform_1(%arg0: i32) -> (i32, i32, i32) {
    %c0_i32 = arith.constant 0 : i32
    %c0_i32_0 = arith.constant 0 : i32
    %c0_i32_1 = arith.constant 0 : i32
    %c0_i32_2 = arith.constant 0 : i32
    return %c0_i32, %c0_i32_0, %c0_i32_1 : i32, i32, i32
  }
  func.func @transform_2(%arg0: i32) -> (i32, i32, i32) {
    %c0_i32 = arith.constant 0 : i32
    %c0_i32_0 = arith.constant 0 : i32
    %c0_i32_1 = arith.constant 0 : i32
    %c0_i32_2 = arith.constant 0 : i32
    return %c0_i32, %c0_i32_0, %c0_i32_1 : i32, i32, i32
  }
  func.func @transform_3(%arg0: i32) -> (i32, i32, i32) {
    %c0_i32 = arith.constant 0 : i32
    %c0_i32_0 = arith.constant 0 : i32
    %c0_i32_1 = arith.constant 0 : i32
    %c0_i32_2 = arith.constant 0 : i32
    return %c0_i32, %c0_i32_0, %c0_i32_1 : i32, i32, i32
  }
  func.func @transform_4(%arg0: i32) -> (i32, i32) {
    %c0_i32 = arith.constant 0 : i32
    %c0_i32_0 = arith.constant 0 : i32
    return %c0_i32, %arg0 : i32, i32
  }
}

</mosaic_0001>

<bundles_post_ra>
// kernel: tpu_custom_call.1
= control target key start
LH: loop header
LB: loop body
LE: loop exit
PB: predicated region body
PF: predicated region fallthrough
CT: control target
= control target key end

     0   :  { %9 = vsyncpa [#allocation4], 0  ;;  %s1924_s0 = inlined_call_operand.hbm [shape: f32[8,512], index: 0, kind: input, shape index: {}]   ;;  %s1925_s1 = inlined_call_operand.hbm [shape: f32[9,8,256], index: 1, kind: input, shape index: {}]   ;;  %s1926_s2 = inlined_call_operand.hbm [shape: f32[3,8,72], index: 2, kind: input, shape index: {}]   ;;  %s1927_s3 = inlined_call_operand.hbm [shape: f32[3,8,256], index: 3, kind: input, shape index: {}]   ;;  %s1928_s4 = inlined_call_operand.hbm [shape: f32[8,512], index: 4, kind: output, shape index: {}]  }
   0x1   :  { %11 = vsyncpa [#allocation4 + $0x1], 0 }
   0x2   :  { %12 = vsyncpa [#allocation7], 0 }
   0x3   :  { %13 = vsyncpa [#allocation10], 0 }
   0x4   :  { %14 = vsyncpa [#allocation5], 0 }
   0x5   :  { %16 = vsyncpa [#allocation5 + $0x1], 0  ;;  %s1379_s15 = smov 0   ;;  %s1381_s16 = smov 0  }
   0x6   :  { %s1383_s17 = smov 0   ;;  %s1385_s18 = smov 0  }
   0x7 LB: > { %s1400_s19 = sadd.s32 4294967295, %s1334_s18   ;;  %s983_s20 = sadd.s32 4294967294, %s1334_s18   ;;  %s1334_s18 = sphi %s1385_s18, %s1953_s18   ;;  %s1330_s17 = sphi %s1383_s17, %s1952_s17   ;;  %s1326_s16 = sphi %s1381_s16, %s1951_s16   ;;  %s1322_s15 = sphi %s1379_s15, %s1950_s15  }
   0x8   : > { %p42_p0 = scmp.ne.s32.totalorder %s1326_s16, %s1322_s15  ;;  %p1929_p1 = scmp.eq.s32.totalorder %s1400_s19, 0 }
   0x9   : > { %p135_p3 = scmp.eq.s32.totalorder %s983_s20, 1  ;;  %p984_p5 = scmp.ge.s32.totalorder %s1334_s18, 1 }
   0xa   : > { %p1409_p4 = por %p1929_p1, %p42_p0  ;;  %p142_p7 = scmp.lt.s32.totalorder %s1334_s18, 3 }
   0xb   : > { %p1414_p6 = por %p135_p3, %p42_p0  ;;  %s1336_s24 = smov [#allocation6]  }
   0xc   : > { %s1933_s21 = scalar_select %p1409_p4, 1, 0 }
   0xd   : > { %s1934_s22 = scalar_select %p1414_p6, 1, 0 }
   0xe   : > { %p1419_p8 = pnand %p984_p5, %p142_p7  ;;  %s154_s25 = sshll.u32 %s1336_s24, 4  ;;  %s1423_s25 = int_to_ptr.vmem [resolvable:$true] %s154_s25 }
   0xf   : > { %s1337_s27 = smov [#allocation8]   ;;  %s1146_s5 = scalar_lea.hbm %s1925_s1, 2304 }
  0x10   : > { %s1935_s23 = scalar_select %p1419_p8, 1, 0 }
  0x11   : > { %p1072_p9 = pneg %p1419_p8  ;;  %s167_s28 = sshll.u32 %s1337_s27, 4  ;;  %s1434_s28 = int_to_ptr.vmem [resolvable:$true] %s167_s28 }
  0x12   : > { %p1147_p12 = scmp.ne.s32.totalorder %s1925_s1, %s1146_s5  ;;  %p1153_p5 = scmp.lt.u32.totalorder %s1146_s5, %s1925_s1 }
  0x13   : > { %p1430_p11 = pnand %p1072_p9, %p1929_p1 }
  0x15   : > { %p1444_p13 = pneg %p1430_p11 }
  0x17   : > { %p1149_p0 = pnand %p1444_p13, %p1147_p12 }
  0x19   : > { %p1150_p3 = pneg %p1149_p0 }
  0x1b   : > { %p1155_p7 = pnand %p1153_p5, %p1150_p3 }
  0x1d   : > { %1158 = shalt.err (!%p1155_p7)
}
  0x1e   : > { %s1159_s11 = scalar_lea.vmem %s1423_s25, 2304  ;;  %p1167_p2 = scmp.lt.s32.totalorder %s1423_s25, %s1423_s25 }
  0x1f   : > { %p1160_p9 = scmp.ne.s32.totalorder %s1423_s25, %s1159_s11  ;;  %p1168_p6 = scmp.lt.s32.totalorder %s1159_s11, %s1159_s11 }
  0x21   : > { %p1162_p10 = pnand %p1160_p9, %p1444_p13  ;;  %p1169_p12 = por %p1168_p6, %p1167_p2 }
  0x23   : > { %p1163_p1 = pneg %p1162_p10 }
  0x25   : > { %p1170_p0 = pnand %p1169_p12, %p1163_p1 }
  0x27   : > { %1173 = shalt.err (!%p1170_p0)
}
  0x28   : > { %s1930_s12 = smov 256   ;;  %s1339_s13 = smov 16  }
  0x29   : > { %1075 = dma.hbm_to_vmem [thread:$0]  (!%p1430_p11), %s1925_s1, 2304, %s1423_s25, [#allocation7], %s1930_s12, %s1930_s12, %s1339_s13  }
  0x2a   : > { %s1174_s29 = scalar_lea.hbm %s1926_s2, 384 }
  0x2b   : > { %p1175_p1 = scmp.ne.s32.totalorder %s1926_s2, %s1174_s29  ;;  %p1181_p10 = scmp.lt.u32.totalorder %s1174_s29, %s1926_s2 }
  0x2d   : > { %p1177_p2 = pnand %p1175_p1, %p1444_p13 }
  0x2f   : > { %p1178_p6 = pneg %p1177_p2 }
  0x31   : > { %p1183_p3 = pnand %p1181_p10, %p1178_p6 }
  0x33   : > { %1186 = shalt.err (!%p1183_p3)
}
  0x34   : > { %s1187_s25 = scalar_lea.vmem %s1434_s28, 384  ;;  %p1195_p12 = scmp.lt.s32.totalorder %s1434_s28, %s1434_s28 }
  0x35   : > { %p1188_p5 = scmp.ne.s32.totalorder %s1434_s28, %s1187_s25  ;;  %p1196_p0 = scmp.lt.s32.totalorder %s1187_s25, %s1187_s25 }
  0x37   : > { %p1190_p7 = pnand %p1188_p5, %p1444_p13  ;;  %p1197_p1 = por %p1196_p0, %p1195_p12 }
  0x39   : > { %p1191_p9 = pneg %p1190_p7 }
  0x3b   : > { %p1198_p2 = pnand %p1197_p1, %p1191_p9 }
  0x3d   : > { %1201 = shalt.err (!%p1198_p2)
}
  0x3e   : > { %s1340_s9 = smov 128   ;;  %s1341_s10 = smov 8  }
  0x3f   : > { %1078 = dma.hbm_to_vmem [thread:$0]  (!%p1430_p11), %s1926_s2, 384, %s1434_s28, [#allocation7], %s1340_s9, %s1340_s9, %s1341_s10  }
  0x40   : > { %s1342_s20 = smov [#allocation9]   ;;  %s1492_s27 = sadd.s32 1, %s1334_s18  }
  0x41   : > { %s180_s24 = sshll.u32 %s1342_s20, 4  ;;  %s1202_s5 = scalar_lea.hbm %s1927_s3, 768  ;;  %s181_s24 = int_to_ptr.vmem [resolvable:$true] %s180_s24 }
  0x42   : > { %p1203_p6 = scmp.ne.s32.totalorder %s1927_s3, %s1202_s5  ;;  %p1209_p5 = scmp.lt.u32.totalorder %s1202_s5, %s1927_s3 }
  0x44   : > { %p1205_p10 = pnand %p1203_p6, %p1444_p13 }
  0x46   : > { %p1206_p3 = pneg %p1205_p10 }
  0x48   : > { %p1211_p7 = pnand %p1209_p5, %p1206_p3 }
  0x4a   : > { %1214 = shalt.err (!%p1211_p7)
}
  0x4b   : > { %s1215_s28 = scalar_lea.vmem %s181_s24, 768  ;;  %p1223_p1 = scmp.lt.s32.totalorder %s181_s24, %s181_s24 }
  0x4c   : > { %p1216_p9 = scmp.ne.s32.totalorder %s181_s24, %s1215_s28  ;;  %p1224_p2 = scmp.lt.s32.totalorder %s1215_s28, %s1215_s28 }
  0x4e   : > { %p1218_p12 = pnand %p1216_p9, %p1444_p13  ;;  %p1225_p4 = por %p1224_p2, %p1223_p1 }
  0x50   : > { %p1219_p0 = pneg %p1218_p12 }
  0x52   : > { %p1226_p8 = pnand %p1225_p4, %p1219_p0 }
  0x54   : > { %1229 = shalt.err (!%p1226_p8)
}
  0x55   : > { %s1938_s9 = smov 256   ;;  %s26_s8 = ssub.s32 %s1334_s18, %s1492_s27 }
  0x56   : > { %1081 = dma.hbm_to_vmem [thread:$0]  (!%p1430_p11), %s1927_s3, 768, %s181_s24, [#allocation10], %s1938_s9, %s1938_s9, %s1339_s13  }
  0x57   : > { %s29_s26 = sadd.s32 1, %s1330_s17  ;;  %p27_p4 = scmp.eq.s32.totalorder %s26_s8, 0 }
  0x58   : > { %p36_p8 = scmp.ne.s32.totalorder %s1330_s17, %s1326_s16  ;;  %p37_p13 = scmp.eq.s32.totalorder %s1334_s18, 0 }
  0x59   : > { %p1093_p6 = scmp.lt.s32.totalorder %s1334_s18, 2  ;;  %p1939_p3 = scmp.eq.s32.totalorder %s1400_s19, 1 }
  0x5a   : > { %s1523_s11 = scalar_select %p27_p4, %s1330_s17, %s29_s26  }
  0x5b   : > { %p38_p10 = por %p37_p13, %p36_p8  ;;  %p1527_p5 = por %p1939_p3, %p36_p8 }
  0x5c   : > { %s194_s20 = sand.u32 1, %s1330_s17   ;;  %s1006_s29 = sshll.u32 %s1334_s18, 8 }
  0x5d   : > { %s989_s30 = sshll.u32 %s194_s20, 4  ;;  %s1536_s13 = scalar_lea.hbm %s1924_s0, %s1006_s29 }
  0x5e   : > { %s198_s24 = scalar_lea.vmem [#allocation3], %s989_s30  ;;  %p1538_p11 = pnand %p1093_p6, %p38_p10 }
  0x5f   : > { %s206_s7 = sshll.u32 %s198_s24, 4  ;;  %s195_s28 = scalar_lea.sflag [#allocation4], %s194_s20  ;;  %s1542_s7 = int_to_ptr.vmem [resolvable:$true] %s206_s7 }
  0x60   : > { %s1230_s9 = scalar_lea.hbm %s1536_s13, 256  ;;  %p1232_p9 = pneg %p1538_p11 }
  0x61   : > { %p1231_p7 = scmp.ne.s32.totalorder %s1536_s13, %s1230_s9  ;;  %s1235_s8 = scalar_lea.hbm %s1924_s0, 512 }
  0x62   : > { %p1236_p1 = scmp.lt.u32.totalorder %s1536_s13, %s1924_s0  ;;  %p1237_p2 = scmp.lt.u32.totalorder %s1235_s8, %s1230_s9 }
  0x63   : > { %p1233_p12 = pnand %p1232_p9, %p1231_p7  ;;  %p1239_p8 = scmp.lt.u32.totalorder %s1230_s9, %s1536_s13 }
  0x64   : > { %p1238_p4 = por %p1237_p2, %p1236_p1 }
  0x65   : > { %p1234_p0 = pneg %p1233_p12 }
  0x66   : > { %p1240_p13 = por %p1239_p8, %p1238_p4 }
  0x68   : > { %p1241_p6 = pnand %p1240_p13, %p1234_p0 }
  0x6a   : > { %1244 = shalt.err (!%p1241_p6)
}
  0x6b   : > { %s1245_s20 = scalar_lea.vmem %s1542_s7, 256  ;;  %s1343_s30 = smov [#allocation3]  }
  0x6c   : > { %p1246_p10 = scmp.ne.s32.totalorder %s1542_s7, %s1245_s20  ;;  %s1250_s5 = sshll.u32 %s1343_s30, 4  ;;  %s1251_s5 = int_to_ptr.vmem [resolvable:$false] %s1250_s5 }
  0x6d   : > { %s1252_s6 = scalar_lea.vmem %s1251_s5, 512  ;;  %p1253_p12 = scmp.lt.s32.totalorder %s1542_s7, %s1251_s5 }
  0x6e   : > { %p1248_p3 = pnand %p1246_p10, %p1232_p9  ;;  %p1254_p1 = scmp.lt.s32.totalorder %s1252_s6, %s1245_s20 }
  0x70   : > { %p1249_p7 = pneg %p1248_p3  ;;  %p1255_p2 = por %p1254_p1, %p1253_p12 }
  0x72   : > { %p1256_p4 = pnand %p1255_p2, %p1249_p7 }
  0x74   : > { %1259 = shalt.err (!%p1256_p4)
}
  0x75   : > { %1085 = dma.hbm_to_vmem [thread:$0]  (!%p1538_p11), %s1536_s13, 256, %s1542_s7, %s195_s28  }
  0x76   : > { %p1942_p0 = scmp.ne.s32.totalorder %s1935_s23, 0 }
  0x77   : > { %s1572_s24 = sand.u32 (!%p1942_p0), 1, %s1326_s16   ;;  %p1943_p9 = scmp.ne.s32.totalorder (!%p1942_p0), %s1933_s21, 0 }
  0x78   : > { %215 = sbr.rel (%p1942_p0) target bundleno = 1249 (0x4e1), region = 36  ;;  %s993_s9 = sshll.u32 (!%p1942_p0), %s1572_s24, 4 }
  0x79   : > { %s218_s12 = scalar_lea.sflag (!%p1942_p0), [#allocation4], %s1572_s24  ;;  %s221_s10 = scalar_lea.vmem (!%p1942_p0), [#allocation3], %s993_s9 }
  0x7f   : > { %1305 = dma.done.wait (%p1943_p9), %s218_s12, 256  }
  0x80   : > { %1307 = vsyncadd (%p1943_p9), %s218_s12, 4294967040  ;;  %p1944_p11 = scmp.eq.s32.totalorder %s1400_s19, 0 }
  0x82   : > { %1309 = dma.done.wait (%p1944_p11), [#allocation7], 2688   ;;  %p1945_p8 = pmov %p1944_p11 }
  0x84   : > { %1311 = vsyncadd (%p1945_p8), [#allocation7], 4294964608  ;;  %p1946_p13 = pmov %p1945_p8 }
  0x85   : > { %p1947_p6 = pmov %p1945_p8 }
  0x86   : > { %1313 = dma.done.wait (%p1946_p13), [#allocation10], 768  }
  0x87   : > { %1315 = vsyncadd (%p1947_p6), [#allocation10], 4294966528  ;;  %v1590_v0 = vld [vmem:[%s221_s10] sm:$0xff]  ;;  %s1344_s23 = smov 16   ;;  %s1345_s21 = smov 17   ;;  %v1596_v1 = vld [vmem:[%s221_s10 + $0x8] sm:$0xff]  ;;  %v266_v3 = vlaneseq }
  0x88   : > { %277 = vrot.lane.b32.xlu1 %v1590_v0, %s1344_s23  ;;  %262 = vrot.lane.b32.xlu0 %v1590_v0, %s1345_s21  ;;  %s1346_s13 = smov 15   ;;  %s1347_s7 = smov 1   ;;  %v1350_v2 = vmov 0.0   ;;  %v1631_v7 = vld [vmem:[#allocation6 + $0x10] sm:$0xff]  ;;  %v1634_v8 = vld [vmem:[#allocation6] sm:$0xff]  ;;  %v1636_v9 = vld [vmem:[#allocation6 + $0x8] sm:$0xff] }
  0x89   : > { %s1348_s25 = smov 127   ;;  %s1349_s28 = smov 113   ;;  %466 = vmatprep.mubr.f32.mxu0 %v1350_v2  ;;  %663 = vmatprep.mubr.f32.mxu1 %v1350_v2  ;;  %v1628_v4 = vand.u32 127, %v266_v3  ;;  %v1638_v10 = vld [vmem:[#allocation6 + $0x18] sm:$0xff]  ;;  %v1653_v25 = vld [vmem:[#allocation6 + $0x20] sm:$0xff]  ;;  %v1656_v26 = vld [vmem:[#allocation6 + $0x28] sm:$0xff] }
  0x8a   : > { %s1351_s8 = smov 112   ;;  %s1352_s26 = smov 111   ;;  %v1662_v29 = vld [vmem:[#allocation6 + $0x30] sm:$0xff]  ;;  %v1664_v30 = vld [vmem:[#allocation6 + $0x38] sm:$0xff]  ;;  %v1688_v53 = vld [vmem:[#allocation6 + $0x60] sm:$0xff]  ;;  %vm398_vm8 = vcmask 588800  }
  0x8b   : > { %vm281_vm0 = vcmp.lt.s32.totalorder %v1628_v4, 16  ;;  %vm268_vm1 = vcmp.lt.s32.totalorder %v1628_v4, 17  ;;  %vm295_vm2 = vcmp.lt.s32.totalorder %v1628_v4, 15  ;;  %vm309_vm3 = vcmp.lt.s32.totalorder %v1628_v4, 1  ;;  %v1675_v39 = vld [vmem:[#allocation6 + $0x50] sm:$0xff]  ;;  %v1677_v40 = vld [vmem:[#allocation6 + $0x58] sm:$0xff] }
  0x8c   : > { %279 = vrot.lane.b32.xlu1 %v1596_v1, %s1344_s23  ;;  %264 = vrot.lane.b32.xlu0 %v1596_v1, %s1345_s21  ;;  %vm325_vm4 = vcmp.lt.s32.totalorder %v1628_v4, 127  ;;  %vm339_vm5 = vcmp.lt.s32.totalorder %v1628_v4, 113  ;;  %vm353_vm6 = vcmp.lt.s32.totalorder %v1628_v4, 112  ;;  %v1691_v54 = vld [vmem:[#allocation6 + $0x68] sm:$0xff]  ;;  %v1697_v57 = vld [vmem:[#allocation6 + $0x70] sm:$0xff]  ;;  %v1699_v58 = vld [vmem:[#allocation6 + $0x78] sm:$0xff] }
  0x8d   : > { %vm367_vm7 = vcmp.lt.s32.totalorder %v1628_v4, 111  ;;  %s1007_s29 = sshll.u32 %s1400_s19, 8  ;;  %s257_s20 = scalar_lea.vmem [#allocation11], %s993_s9 }
  0x8e   : > { %s884_s30 = sshll.u32 %s257_s20, 4  ;;  %s1880_s12 = scalar_lea.hbm %s1928_s4, %s1007_s29  ;;  %s1882_s30 = int_to_ptr.vmem [resolvable:$true] %s884_s30 }
  0x8f   : > { %s870_s19 = scalar_lea.sflag [#allocation5], %s1572_s24  ;;  %s1260_s10 = scalar_lea.vmem %s1882_s30, 256 }
  0x90   : > { %293 = vrot.lane.b32.xlu1 %v1596_v1, %s1346_s13  ;;  %291 = vrot.lane.b32.xlu0 %v1590_v0, %s1346_s13  ;;  %p1261_p10 = scmp.ne.s32.totalorder %s1882_s30, %s1260_s10  ;;  %s1353_s9 = smov [#allocation11]  }
  0x92   : > { %p1262_p3 = pnand %p1261_p10, %p1527_p5 }
  0x94   : > { %307 = vrot.lane.b32.xlu1 %v1596_v1, %s1347_s7  ;;  %305 = vrot.lane.b32.xlu0 %v1590_v0, %s1347_s7  ;;  %p1263_p7 = pneg %p1262_p3 }
  0x98   : > { %323 = vrot.lane.b32.xlu1 %v1596_v1, %s1348_s25  ;;  %321 = vrot.lane.b32.xlu0 %v1590_v0, %s1348_s25 }
  0x9c   : > { %337 = vrot.lane.b32.xlu1 %v1596_v1, %s1349_s28  ;;  %335 = vrot.lane.b32.xlu0 %v1590_v0, %s1349_s28 }
  0xa0   : > { %351 = vrot.lane.b32.xlu1 %v1596_v1, %s1351_s8  ;;  %349 = vrot.lane.b32.xlu0 %v1590_v0, %s1351_s8 }
  0xa4   : > { %365 = vrot.lane.b32.xlu1 %v1596_v1, %s1352_s26  ;;  %363 = vrot.lane.b32.xlu0 %v1590_v0, %s1352_s26 }
  0xfa   : > { %v278_v5 = vpop.permute.xlu1 %277  ;;  %v263_v6 = vpop.permute.xlu0 %262 }
  0xfe   : > { %v280_v11 = vpop.permute.xlu1 %279  ;;  %v265_v12 = vpop.permute.xlu0 %264 }
  0xff   : > { %v282_v13 = vsel %vm281_vm0, %v278_v5, %v280_v11  ;;  %v283_v14 = vsel %vm281_vm0, %v280_v11, %v278_v5  ;;  %v269_v15 = vsel %vm268_vm1, %v263_v6, %v265_v12  ;;  %v270_v16 = vsel %vm268_vm1, %v265_v12, %v263_v6  ;;  %v1710_v5 = vld [vmem:[#allocation6 + $0x88] sm:$0xff]  ;;  %v1712_v12 = vld [vmem:[#allocation6 + $0x80] sm:$0xff] }
 0x100   : > { %v287_v17 = vmul.f32 %v1631_v7, %v283_v14  ;;  %v273_v18 = vmul.f32 %v1634_v8, %v270_v16  ;;  %v274_v19 = vmul.f32 %v1636_v9, %v269_v15  ;;  %v288_v20 = vmul.f32 %v1638_v10, %v282_v13 }
 0x102   : > { %v294_v21 = vpop.permute.xlu1 %293  ;;  %v292_v22 = vpop.permute.xlu0 %291  ;;  %v1008_v23 = vpack.c.bf16 %v288_v20, %v274_v19  ;;  %v1010_v24 = vpack.c.bf16 %v287_v17, %v273_v18  ;;  %v377_v19 = vld [vmem:[#allocation8] sm:$0xff]  ;;  %v396_v20 = vld [vmem:[#allocation9] sm:$0xff] }
 0x103   : > { %v296_v27 = vsel %vm295_vm2, %v292_v22, %v294_v21  ;;  %v297_v28 = vsel %vm295_vm2, %v294_v21, %v292_v22  ;;  %v397_v21 = vld [vmem:[#allocation9 + $0x8] sm:$0xff] }
 0x104   : > { %1009 = vmatprep.subr.bf16.mxu0 %v1008_v23  ;;  %v301_v35 = vmul.f32 %v1653_v25, %v297_v28  ;;  %v302_v36 = vmul.f32 %v1656_v26, %v296_v27 }
 0x105   : > { %1011 = vmatpush1.bf16.msra.mxu0 %v1010_v24 }
 0x106   : > { %v308_v31 = vpop.permute.xlu1 %307  ;;  %v306_v32 = vpop.permute.xlu0 %305 }
 0x107   : > { %v310_v33 = vsel %vm309_vm3, %v306_v32, %v308_v31  ;;  %v311_v34 = vsel %vm309_vm3, %v308_v31, %v306_v32 }
 0x108   : > { %v315_v37 = vmul.f32 %v1662_v29, %v311_v34  ;;  %v316_v38 = vmul.f32 %v1664_v30, %v310_v33 }
 0x10a   : > { %v324_v41 = vpop.permute.xlu1 %323  ;;  %v322_v42 = vpop.permute.xlu0 %321  ;;  %v1012_v43 = vpack.c.bf16 %v316_v38, %v302_v36  ;;  %v1014_v44 = vpack.c.bf16 %v315_v37, %v301_v35 }
 0x10b   : > { %v326_v45 = vsel %vm325_vm4, %v322_v42, %v324_v41  ;;  %v327_v46 = vsel %vm325_vm4, %v324_v41, %v322_v42 }
 0x10c   : > { %v331_v47 = vmul.f32 %v1675_v39, %v326_v45  ;;  %v332_v48 = vmul.f32 %v1677_v40, %v327_v46  ;;  %1013 = vmatprep.subr.bf16.mxu0 %v1012_v43 }
 0x10d   : > { %1015 = vmatpush1.bf16.msra.mxu0 %v1014_v44 }
 0x10e   : > { %v338_v49 = vpop.permute.xlu1 %337  ;;  %v336_v50 = vpop.permute.xlu0 %335  ;;  %v1016_v51 = vpack.c.bf16 %v332_v48, %v1596_v1  ;;  %v1018_v52 = vpack.c.bf16 %v331_v47, %v1590_v0 }
 0x10f   : > { %v340_v55 = vsel %vm339_vm5, %v336_v50, %v338_v49  ;;  %v341_v56 = vsel %vm339_vm5, %v338_v49, %v336_v50 }
 0x110   : > { %1017 = vmatprep.subr.bf16.mxu0 %v1016_v51  ;;  %v345_v63 = vmul.f32 %v1688_v53, %v340_v55  ;;  %v346_v0 = vmul.f32 %v1691_v54, %v341_v56 }
 0x111   : > { %1019 = vmatpush1.bf16.msra.mxu0 %v1018_v52 }
 0x112   : > { %v352_v59 = vpop.permute.xlu1 %351  ;;  %v350_v60 = vpop.permute.xlu0 %349 }
 0x113   : > { %v354_v61 = vsel %vm353_vm6, %v350_v60, %v352_v59  ;;  %v355_v62 = vsel %vm353_vm6, %v352_v59, %v350_v60 }
 0x114   : > { %v359_v1 = vmul.f32 %v1697_v57, %v354_v61  ;;  %v360_v3 = vmul.f32 %v1699_v58, %v355_v62 }
 0x116   : > { %v366_v6 = vpop.permute.xlu1 %365  ;;  %v1020_v11 = vpack.c.bf16 %v360_v3, %v346_v0  ;;  %v364_v13 = vpop.permute.xlu0 %363  ;;  %v1022_v14 = vpack.c.bf16 %v359_v1, %v345_v63 }
 0x117   : > { %v368_v15 = vsel %vm367_vm7, %v364_v13, %v366_v6  ;;  %v369_v16 = vsel %vm367_vm7, %v366_v6, %v364_v13 }
 0x118   : > { %1021 = vmatprep.subr.bf16.mxu0 %v1020_v11  ;;  %v374_v17 = vmul.f32 %v1710_v5, %v369_v16  ;;  %v373_v18 = vmul.f32 %v1712_v12, %v368_v15 }
 0x119   : > { %1023 = vmatpush1.bf16.msra.mxu0 %v1022_v14 }
 0x11a   : > { %418 = vmatprep.subr.mxu0 %v374_v17 }
 0x11d   : > { %419 = vmatpush1.msra.mxu0 %v373_v18 }
 0x11e   : > { %998 = vmatmul.mubr.msk.f32.vlgmr.msra.gmra.mrb[0].mxu0 %vm398_vm8, %v377_v19 }
 0x11f   : > { %860 = vmatprep.mubr.f32.mxu0 %v1350_v2 }
 0x1f1   : > { %v468_v22 = vpop.f32.mrb[0].mxu0 }
 0x1f2   : > { %v469_v23 = vadd.f32 %v468_v22, %v396_v20  ;;  %v470_v24 = vpop.f32.mrb[1].mxu0 }
 0x1f3   : > { %v471_v27 = vadd.f32 %v470_v24, %v397_v21 }
 0x1f4   : > { %v1722_v28 = vmax.f32 %v469_v23, 0.0 }
 0x1f5   : > { %v474_v31 = vmax.f32 %v471_v27, 0.0 }
 0x1f6   : > { %475 = vrot.lane.b32.xlu0 %v1722_v28, %s1345_s21 }
 0x1f7   : > { %477 = vrot.lane.b32.xlu1 %v474_v31, %s1345_s21 }
 0x1fa   : > { %487 = vrot.lane.b32.xlu0 %v1722_v28, %s1344_s23 }
 0x1fb   : > { %489 = vrot.lane.b32.xlu1 %v474_v31, %s1344_s23 }
 0x1fe   : > { %499 = vrot.lane.b32.xlu0 %v1722_v28, %s1346_s13 }
 0x1ff   : > { %501 = vrot.lane.b32.xlu1 %v474_v31, %s1346_s13 }
 0x202   : > { %511 = vrot.lane.b32.xlu0 %v1722_v28, %s1347_s7 }
 0x203   : > { %513 = vrot.lane.b32.xlu1 %v474_v31, %s1347_s7 }
 0x206   : > { %525 = vrot.lane.b32.xlu0 %v1722_v28, %s1348_s25 }
 0x207   : > { %527 = vrot.lane.b32.xlu1 %v474_v31, %s1348_s25 }
 0x20a   : > { %537 = vrot.lane.b32.xlu0 %v1722_v28, %s1349_s28 }
 0x20b   : > { %539 = vrot.lane.b32.xlu1 %v474_v31, %s1349_s28 }
 0x20e   : > { %549 = vrot.lane.b32.xlu0 %v1722_v28, %s1351_s8 }
 0x20f   : > { %551 = vrot.lane.b32.xlu1 %v474_v31, %s1351_s8 }
 0x212   : > { %561 = vrot.lane.b32.xlu0 %v1722_v28, %s1352_s26 }
 0x213   : > { %563 = vrot.lane.b32.xlu1 %v474_v31, %s1352_s26 }
 0x268   : > { %v476_v2 = vpop.permute.xlu0 %475 }
 0x269   : > { %v478_v32 = vpop.permute.xlu1 %477 }
 0x26a   : > { %v479_v33 = vsel %vm268_vm1, %v476_v2, %v478_v32  ;;  %v480_v34 = vsel %vm268_vm1, %v478_v32, %v476_v2 }
 0x26b   : > { %v483_v41 = vmul.f32 %v480_v34, %v1634_v8  ;;  %v484_v43 = vmul.f32 %v479_v33, %v1636_v9 }
 0x26c   : > { %v488_v35 = vpop.permute.xlu0 %487 }
 0x26d   : > { %v490_v36 = vpop.permute.xlu1 %489 }
 0x26e   : > { %v491_v37 = vsel %vm281_vm0, %v488_v35, %v490_v36  ;;  %v492_v38 = vsel %vm281_vm0, %v490_v36, %v488_v35 }
 0x26f   : > { %v495_v42 = vmul.f32 %v492_v38, %v1631_v7  ;;  %v496_v44 = vmul.f32 %v491_v37, %v1638_v10 }
 0x270   : > { %v500_v45 = vpop.permute.xlu0 %499 }
 0x271   : > { %v502_v46 = vpop.permute.xlu1 %501  ;;  %v1024_v47 = vpack.c.bf16 %v496_v44, %v484_v43  ;;  %v1026_v48 = vpack.c.bf16 %v495_v42, %v483_v41  ;;  %v574_v42 = vld [vmem:[#allocation8 + $0x8] sm:$0xff]  ;;  %v595_v44 = vld [vmem:[#allocation9 + $0x18] sm:$0xff] }
 0x272   : > { %v503_v49 = vsel %vm295_vm2, %v500_v45, %v502_v46  ;;  %v504_v50 = vsel %vm295_vm2, %v502_v46, %v500_v45  ;;  %v594_v43 = vld [vmem:[#allocation9 + $0x10] sm:$0xff] }
 0x273   : > { %1025 = vmatprep.subr.bf16.mxu1 %v1024_v47  ;;  %v507_v59 = vmul.f32 %v504_v50, %v1653_v25  ;;  %v508_v60 = vmul.f32 %v503_v49, %v1656_v26 }
 0x274   : > { %1027 = vmatpush1.bf16.msra.mxu1 %v1026_v48  ;;  %v512_v51 = vpop.permute.xlu0 %511 }
 0x275   : > { %v514_v52 = vpop.permute.xlu1 %513 }
 0x276   : > { %v515_v55 = vsel %vm309_vm3, %v512_v51, %v514_v52  ;;  %v516_v56 = vsel %vm309_vm3, %v514_v52, %v512_v51 }
 0x277   : > { %v519_v61 = vmul.f32 %v516_v56, %v1662_v29  ;;  %v520_v62 = vmul.f32 %v515_v55, %v1664_v30 }
 0x278   : > { %v526_v63 = vpop.permute.xlu0 %525 }
 0x279   : > { %v528_v0 = vpop.permute.xlu1 %527  ;;  %v1028_v1 = vpack.c.bf16 %v520_v62, %v508_v60  ;;  %v1030_v3 = vpack.c.bf16 %v519_v61, %v507_v59 }
 0x27a   : > { %v529_v6 = vsel %vm325_vm4, %v526_v63, %v528_v0  ;;  %v530_v11 = vsel %vm325_vm4, %v528_v0, %v526_v63 }
 0x27b   : > { %v533_v13 = vmul.f32 %v529_v6, %v1675_v39  ;;  %v534_v14 = vmul.f32 %v530_v11, %v1677_v40  ;;  %1029 = vmatprep.subr.bf16.mxu1 %v1028_v1 }
 0x27c   : > { %1031 = vmatpush1.bf16.msra.mxu1 %v1030_v3  ;;  %v538_v15 = vpop.permute.xlu0 %537 }
 0x27d   : > { %v540_v16 = vpop.permute.xlu1 %539  ;;  %v1032_v17 = vpack.c.bf16 %v534_v14, %v474_v31  ;;  %v1034_v18 = vpack.c.bf16 %v533_v13, %v1722_v28 }
 0x27e   : > { %v541_v19 = vsel %vm339_vm5, %v538_v15, %v540_v16  ;;  %v542_v20 = vsel %vm339_vm5, %v540_v16, %v538_v15 }
 0x27f   : > { %1033 = vmatprep.subr.bf16.mxu1 %v1032_v17  ;;  %v545_v27 = vmul.f32 %v541_v19, %v1688_v53  ;;  %v546_v28 = vmul.f32 %v542_v20, %v1691_v54 }
 0x280   : > { %1035 = vmatpush1.bf16.msra.mxu1 %v1034_v18  ;;  %v550_v21 = vpop.permute.xlu0 %549 }
 0x281   : > { %v552_v22 = vpop.permute.xlu1 %551 }
 0x282   : > { %v553_v23 = vsel %vm353_vm6, %v550_v21, %v552_v22  ;;  %v554_v24 = vsel %vm353_vm6, %v552_v22, %v550_v21 }
 0x283   : > { %v557_v31 = vmul.f32 %v553_v23, %v1697_v57  ;;  %v558_v2 = vmul.f32 %v554_v24, %v1699_v58 }
 0x284   : > { %v562_v32 = vpop.permute.xlu0 %561 }
 0x285   : > { %v564_v33 = vpop.permute.xlu1 %563  ;;  %v1036_v34 = vpack.c.bf16 %v558_v2, %v546_v28  ;;  %v1038_v35 = vpack.c.bf16 %v557_v31, %v545_v27 }
 0x286   : > { %v566_v36 = vsel %vm367_vm7, %v564_v33, %v562_v32  ;;  %v565_v37 = vsel %vm367_vm7, %v562_v32, %v564_v33 }
 0x287   : > { %v570_v38 = vmul.f32 %v566_v36, %v1710_v5  ;;  %1037 = vmatprep.subr.bf16.mxu1 %v1036_v34  ;;  %v569_v41 = vmul.f32 %v565_v37, %v1712_v12 }
 0x288   : > { %1039 = vmatpush1.bf16.msra.mxu1 %v1038_v35 }
 0x289   : > { %615 = vmatprep.subr.mxu1 %v570_v38 }
 0x28c   : > { %616 = vmatpush1.msra.mxu1 %v569_v41 }
 0x28d   : > { %999 = vmatmul.mubr.msk.f32.vlgmr.msra.gmra.mrb[0].mxu1 %vm398_vm8, %v574_v42 }
 0x360   : > { %v665_v45 = vpop.f32.mrb[0].mxu1 }
 0x361   : > { %v666_v46 = vadd.f32 %v665_v45, %v594_v43  ;;  %v667_v47 = vpop.f32.mrb[1].mxu1 }
 0x362   : > { %v668_v48 = vadd.f32 %v667_v47, %v595_v44 }
 0x363   : > { %v1798_v49 = vmax.f32 %v666_v46, 0.0 }
 0x364   : > { %v671_v50 = vmax.f32 %v668_v48, 0.0  ;;  %v792_v48 = vld [vmem:[#allocation9 + $0x28] sm:$0xff] }
 0x365   : > { %672 = vrot.lane.b32.xlu0 %v1798_v49, %s1345_s21 }
 0x366   : > { %674 = vrot.lane.b32.xlu1 %v671_v50, %s1345_s21 }
 0x369   : > { %684 = vrot.lane.b32.xlu0 %v1798_v49, %s1344_s23 }
 0x36a   : > { %686 = vrot.lane.b32.xlu1 %v671_v50, %s1344_s23  ;;  %s1264_s23 = sshll.u32 %s1353_s9, 4  ;;  %s1265_s23 = int_to_ptr.vmem [resolvable:$false] %s1264_s23 }
 0x36b   : > { %s1266_s21 = scalar_lea.vmem %s1265_s23, 512  ;;  %p1267_p12 = scmp.lt.s32.totalorder %s1882_s30, %s1265_s23 }
 0x36c   : > { %p1268_p1 = scmp.lt.s32.totalorder %s1266_s21, %s1260_s10 }
 0x36d   : > { %696 = vrot.lane.b32.xlu0 %v1798_v49, %s1346_s13 }
 0x36e   : > { %698 = vrot.lane.b32.xlu1 %v671_v50, %s1346_s13  ;;  %p1269_p2 = por %p1268_p1, %p1267_p12 }
 0x370   : > { %p1270_p4 = pnand %p1269_p2, %p1263_p7 }
 0x371   : > { %708 = vrot.lane.b32.xlu0 %v1798_v49, %s1347_s7 }
 0x372   : > { %710 = vrot.lane.b32.xlu1 %v671_v50, %s1347_s7 }
 0x375   : > { %722 = vrot.lane.b32.xlu0 %v1798_v49, %s1348_s25 }
 0x376   : > { %724 = vrot.lane.b32.xlu1 %v671_v50, %s1348_s25 }
 0x379   : > { %734 = vrot.lane.b32.xlu0 %v1798_v49, %s1349_s28 }
 0x37a   : > { %736 = vrot.lane.b32.xlu1 %v671_v50, %s1349_s28 }
 0x37d   : > { %746 = vrot.lane.b32.xlu0 %v1798_v49, %s1351_s8 }
 0x37e   : > { %748 = vrot.lane.b32.xlu1 %v671_v50, %s1351_s8 }
 0x381   : > { %758 = vrot.lane.b32.xlu0 %v1798_v49, %s1352_s26 }
 0x382   : > { %760 = vrot.lane.b32.xlu1 %v671_v50, %s1352_s26 }
 0x3d7   : > { %v673_v51 = vpop.permute.xlu0 %672 }
 0x3d8   : > { %v675_v52 = vpop.permute.xlu1 %674 }
 0x3d9   : > { %v676_v55 = vsel %vm268_vm1, %v673_v51, %v675_v52  ;;  %v677_v56 = vsel %vm268_vm1, %v675_v52, %v673_v51 }
 0x3da   : > { %v680_v63 = vmul.f32 %v677_v56, %v1634_v8  ;;  %v681_v0 = vmul.f32 %v676_v55, %v1636_v9 }
 0x3db   : > { %v685_v59 = vpop.permute.xlu0 %684 }
 0x3dc   : > { %v687_v60 = vpop.permute.xlu1 %686 }
 0x3dd   : > { %v688_v61 = vsel %vm281_vm0, %v685_v59, %v687_v60  ;;  %v689_v62 = vsel %vm281_vm0, %v687_v60, %v685_v59 }
 0x3de   : > { %v692_v1 = vmul.f32 %v689_v62, %v1631_v7  ;;  %v693_v3 = vmul.f32 %v688_v61, %v1638_v10 }
 0x3df   : > { %v697_v6 = vpop.permute.xlu0 %696 }
 0x3e0   : > { %v1042_v11 = vpack.c.bf16 %v692_v1, %v680_v63  ;;  %v699_v13 = vpop.permute.xlu1 %698  ;;  %v1040_v14 = vpack.c.bf16 %v693_v3, %v681_v0 }
 0x3e1   : > { %v700_v15 = vsel %vm295_vm2, %v697_v6, %v699_v13  ;;  %v701_v16 = vsel %vm295_vm2, %v699_v13, %v697_v6 }
 0x3e2   : > { %1041 = vmatprep.subr.bf16.mxu0 %v1040_v14  ;;  %v704_v10 = vmul.f32 %v701_v16, %v1653_v25  ;;  %v705_v18 = vmul.f32 %v700_v15, %v1656_v26 }
 0x3e3   : > { %1043 = vmatpush1.bf16.msra.mxu0 %v1042_v11  ;;  %v709_v17 = vpop.permute.xlu0 %708 }
 0x3e4   : > { %v711_v8 = vpop.permute.xlu1 %710 }
 0x3e5   : > { %v712_v9 = vsel %vm309_vm3, %v709_v17, %v711_v8  ;;  %v713_v7 = vsel %vm309_vm3, %v711_v8, %v709_v17 }
 0x3e6   : > { %v716_v19 = vmul.f32 %v713_v7, %v1662_v29  ;;  %v717_v20 = vmul.f32 %v712_v9, %v1664_v30 }
 0x3e7   : > { %v723_v21 = vpop.permute.xlu0 %722 }
 0x3e8   : > { %v1046_v22 = vpack.c.bf16 %v716_v19, %v704_v10  ;;  %v725_v23 = vpop.permute.xlu1 %724  ;;  %v1044_v24 = vpack.c.bf16 %v717_v20, %v705_v18 }
 0x3e9   : > { %v726_v27 = vsel %vm325_vm4, %v723_v21, %v725_v23  ;;  %v727_v28 = vsel %vm325_vm4, %v725_v23, %v723_v21 }
 0x3ea   : > { %v730_v31 = vmul.f32 %v726_v27, %v1675_v39  ;;  %v731_v25 = vmul.f32 %v727_v28, %v1677_v40  ;;  %1045 = vmatprep.subr.bf16.mxu0 %v1044_v24 }
 0x3eb   : > { %1047 = vmatpush1.bf16.msra.mxu0 %v1046_v22  ;;  %v735_v26 = vpop.permute.xlu0 %734 }
 0x3ec   : > { %v1050_v29 = vpack.c.bf16 %v730_v31, %v1798_v49  ;;  %v737_v30 = vpop.permute.xlu1 %736  ;;  %v1048_v2 = vpack.c.bf16 %v731_v25, %v671_v50 }
 0x3ed   : > { %v738_v32 = vsel %vm339_vm5, %v735_v26, %v737_v30  ;;  %v739_v33 = vsel %vm339_vm5, %v737_v30, %v735_v26 }
 0x3ee   : > { %1049 = vmatprep.subr.bf16.mxu0 %v1048_v2  ;;  %v742_v36 = vmul.f32 %v738_v32, %v1688_v53  ;;  %v743_v37 = vmul.f32 %v739_v33, %v1691_v54 }
 0x3ef   : > { %1051 = vmatpush1.bf16.msra.mxu0 %v1050_v29  ;;  %v747_v34 = vpop.permute.xlu0 %746 }
 0x3f0   : > { %v749_v35 = vpop.permute.xlu1 %748 }
 0x3f1   : > { %v750_v39 = vsel %vm353_vm6, %v747_v34, %v749_v35  ;;  %v751_v40 = vsel %vm353_vm6, %v749_v35, %v747_v34 }
 0x3f2   : > { %v754_v38 = vmul.f32 %v750_v39, %v1697_v57  ;;  %v755_v41 = vmul.f32 %v751_v40, %v1699_v58  ;;  %v771_v57 = vld [vmem:[#allocation8 + $0x10] sm:$0xff]  ;;  %v791_v58 = vld [vmem:[#allocation9 + $0x20] sm:$0xff] }
 0x3f3   : > { %v759_v42 = vpop.permute.xlu0 %758 }
 0x3f4   : > { %v1054_v43 = vpack.c.bf16 %v754_v38, %v742_v36  ;;  %v761_v44 = vpop.permute.xlu1 %760  ;;  %v1052_v45 = vpack.c.bf16 %v755_v41, %v743_v37 }
 0x3f5   : > { %v763_v46 = vsel %vm367_vm7, %v761_v44, %v759_v42  ;;  %v762_v47 = vsel %vm367_vm7, %v759_v42, %v761_v44 }
 0x3f6   : > { %v767_v53 = vmul.f32 %v763_v46, %v1710_v5  ;;  %1053 = vmatprep.subr.bf16.mxu0 %v1052_v45  ;;  %v766_v54 = vmul.f32 %v762_v47, %v1712_v12 }
 0x3f7   : > { %1055 = vmatpush1.bf16.msra.mxu0 %v1054_v43 }
 0x3f8   : > { %812 = vmatprep.subr.mxu0 %v767_v53 }
 0x3fb   : > { %813 = vmatpush1.msra.mxu0 %v766_v54 }
 0x3fc   : > { %1000 = vmatmul.mubr.msk.f32.vlgmr.msra.gmra.mrb[2].mxu0 %vm398_vm8, %v771_v57 }
 0x4cf   : > { %v862_v4 = vpop.f32.mrb[2].mxu0 }
 0x4d0   : > { %v863_v49 = vadd.f32 %v862_v4, %v791_v58  ;;  %v864_v5 = vpop.f32.mrb[3].mxu0 }
 0x4d1   : > { %v865_v50 = vadd.f32 %v864_v5, %v792_v48 }
 0x4d2   : > { %867 = vst [vmem:[%s257_s20] sm:$0xff] %v863_v49 }
 0x4d3   : > { %868 = vst [vmem:[%s257_s20 + $0x8] sm:$0xff] %v865_v50 }
 0x4d4   : > { %1273 = shalt.err (!%p1270_p4)
}
 0x4d5   : > { %s1274_s24 = scalar_lea.hbm %s1880_s12, 256  ;;  %s1278_s25 = scalar_lea.hbm %s1928_s4, 512 }
 0x4d6   : > { %p1275_p0 = scmp.ne.s32.totalorder %s1880_s12, %s1274_s24  ;;  %p1279_p8 = scmp.lt.u32.totalorder %s1880_s12, %s1928_s4 }
 0x4d7   : > { %p1280_p13 = scmp.lt.u32.totalorder %s1278_s25, %s1274_s24  ;;  %p1282_p10 = scmp.lt.u32.totalorder %s1274_s24, %s1880_s12 }
 0x4d8   : > { %p1276_p9 = pnand %p1275_p0, %p1527_p5 }
 0x4d9   : > { %p1281_p6 = por %p1280_p13, %p1279_p8 }
 0x4da   : > { %p1277_p11 = pneg %p1276_p9 }
 0x4db   : > { %p1283_p3 = por %p1282_p10, %p1281_p6 }
 0x4dd   : > { %p1284_p7 = pnand %p1283_p3, %p1277_p11 }
 0x4df   : > { %1287 = shalt.err (!%p1284_p7)
}
 0x4e0   : > { %1070 = dma.vmem_to_hbm [thread:$0]  (%p1527_p5), %s1882_s30, 256, %s1880_s12, %s870_s19  }
 0x4e1 PF: > { %s896_s26 = sand.u32 1, %s1322_s15   ;;  %p1948_p12 = scmp.ne.s32.totalorder %s1934_s22, 0 }
 0x4e2   : > { %p1949_p1 = scmp.ge.s32.totalorder %s1334_s18, 2  ;;  %s897_s29 = scalar_lea.sflag [#allocation5], %s896_s26 }
 0x4e4   : > { %p1087_p2 = pnand %p1949_p1, %p1948_p12 }
 0x4e6   : > { %1317 = dma.done.wait (!%p1087_p2), %s897_s29, 256  }
 0x4e7   : > { %1319 = vsyncadd (!%p1087_p2), %s897_s29, 4294967040  ;;  %p19_p4 = scmp.ge.s32.totalorder %s1492_s27, 4   ;;  %s1950_s15 = smov %s1326_s16 }
 0x4e8   : > { %s1951_s16 = smov %s1330_s17  ;;  %s1952_s17 = smov %s1523_s11 }
 0x4e9   : > { %s1953_s18 = smov %s1492_s27  ;;  %21 = sbr.rel (!%p19_p4) target bundleno = 7 (0x7), region = 104 }
 0x4f0   :  { %902 = vsyncpa [#allocation4], 1 }
 0x4f1   :  { %904 = vsyncpa [#allocation4 + $0x1], 1 }
 0x4f2   :  { %905 = vsyncpa [#allocation7], 1 }
 0x4f3   :  { %906 = vsyncpa [#allocation10], 1 }
 0x4f4   :  { %907 = vsyncpa [#allocation5], 1 }
 0x4f5   :  { %909 = vsyncpa [#allocation5 + $0x1], 1 }

</bundles_post_ra>
